<compile_context>
chip_gen: v5e
topology: v5e:2x2
jax: 0.10.0
libtpu: 0.0.40
codegen_flags: <defaults>
</compile_context>

<pallas_src>
import jax
import jax.numpy as jnp
from jax.experimental import pallas as pl
from jax.experimental.pallas import tpu as pltpu


def _round_up(x, m):
    return -(-x // m) * m


def _moe_mixer_kernel(bd_ref, h_a_ref, h_b_ref, wad_ref, wbd_ref, o_ref):
    # bd_ref : SMEM (1,)      f32 router bias difference b[0]-b[1]
    # h_a_ref: VMEM (TM, D)   expert-A hidden (input dtype)
    # h_b_ref: VMEM (TM, D)   expert-B hidden (input dtype)
    # wad_ref: VMEM (1, D)    W[0,:D]-W[1,:D]  (input dtype, acts on h_A)
    # wbd_ref: VMEM (1, D)    W[0,D:]-W[1,D:]  (input dtype, acts on h_B)
    # o_ref  : VMEM (TM, D)   mixed output
    h_a = h_a_ref[...]
    h_b = h_b_ref[...]

    # Single fused cross-lane reduce; multiplies stay in the native dtype,
    # only the accumulation is promoted to f32. Shape (TM, 1).
    delta = jnp.sum(h_a * wad_ref[...] + h_b * wbd_ref[...],
                    axis=-1, keepdims=True, dtype=jnp.float32) + bd_ref[0]

    # Exact 2-way softmax: w_A = sigmoid(logit_0 - logit_1). Stable:
    # exp(-delta) only overflows toward +inf, where w_A -> 0 cleanly.
    w_a = 1.0 / (1.0 + jnp.exp(-delta))

    # Lerp-style mix in the native dtype (bf16 stays bf16 on v6e/v7x).
    w_a = w_a.astype(h_a.dtype)
    o_ref[...] = (h_b + w_a * (h_a - h_b)).astype(o_ref.dtype)


def moe_soft_routing_mixer(h_a, h_b, W, b, *, tm=None, vmem_limit_bytes=None):
    """h_a, h_b: [N, D]; W: [2, 2*D]; b: [2]. Returns [N, D]."""
    N, D = h_a.shape
    assert h_b.shape == (N, D)
    assert W.shape == (2, 2 * D) and b.shape == (2,)

    dtype = h_a.dtype
    itemsize = jnp.dtype(dtype).itemsize
    row_mult = 16 if itemsize == 2 else 8          # sublane packing granule

    # ---- logit-difference parameters (tiny wrapper-side precompute) --------
    wa_diff = (W[0, :D] - W[1, :D]).astype(dtype).reshape(1, D)
    wb_diff = (W[0, D:] - W[1, D:]).astype(dtype).reshape(1, D)
    b_diff = (b[0] - b[1]).astype(jnp.float32).reshape(1)

    # ---- generation-aware VMEM limit (~75% of physical per-core VMEM) ------
    if vmem_limit_bytes is None:
        try:
            phys = pltpu.get_tpu_info().vmem_capacity_bytes
        except Exception:
            phys = 64 * 1024 * 1024                # conservative fallback
        vmem_limit_bytes = int(phys * 0.75)

    # ---- token tile: biggest that fits the double-buffered stream budget ---
    if tm is None:
        budget = int(vmem_limit_bytes * 0.75)      # headroom for scratch/f32 temps
        per_row = 2 * 3 * D * itemsize             # 2-deep bufs x (h_A, h_B, out)
        tm = min(1024, max(row_mult, budget // per_row))
    # Keep >= 2 grid steps per TensorCore (assume up to 2 cores/chip) so the
    # BlockSpec pipeline can actually overlap DMA with compute.
    min_steps = 2 * 2
    tm_cap = _round_up(-(-N // min_steps), row_mult)
    tm = min(tm, tm_cap)
    tm = max(row_mult, (tm // row_mult) * row_mult)

    grid = (-(-N // tm),)                          # ragged last block is masked

    out = pl.pallas_call(
        _moe_mixer_kernel,
        out_shape=jax.ShapeDtypeStruct((N, D), dtype),
        grid=grid,
        in_specs=[
            pl.BlockSpec(memory_space=pltpu.SMEM),       # bias difference scalar
            pl.BlockSpec((tm, D), lambda i: (i, 0)),     # h_A row tile
            pl.BlockSpec((tm, D), lambda i: (i, 0)),     # h_B row tile
            pl.BlockSpec((1, D), lambda i: (0, 0)),      # wa_diff (resident)
            pl.BlockSpec((1, D), lambda i: (0, 0)),      # wb_diff (resident)
        ],
        out_specs=pl.BlockSpec((tm, D), lambda i: (i, 0)),
        compiler_params=pltpu.CompilerParams(
            dimension_semantics=("parallel",),           # 2-TC sharding on v7x
            vmem_limit_bytes=vmem_limit_bytes),
    )(b_diff, h_a, h_b, wa_diff, wb_diff)
    return out


def _reference(h_a, h_b, W, b):
    x = jnp.concatenate([h_a, h_b], axis=-1)
    logits = x @ W.T + b
    w = jax.nn.softmax(logits, axis=-1)
    return w[:, 0:1] * h_a + w[:, 1:2] * h_b


if __name__ == "__main__":
    d_model = 32
    batch = 16

    key = jax.random.PRNGKey(0)
    k_ha, k_hb, k_w, k_b = jax.random.split(key, 4)

    h_A = jax.random.normal(k_ha, (batch, d_model), dtype=jnp.float32)
    h_B = jax.random.normal(k_hb, (batch, d_model), dtype=jnp.float32)

    # Deterministic init mimicking nn.Linear(2*d_model, 2): U(+/- 1/sqrt(fan_in))
    fan_in = 2 * d_model
    bound = 1.0 / (fan_in ** 0.5)
    W = jax.random.uniform(k_w, (2, 2 * d_model), minval=-bound, maxval=bound,
                           dtype=jnp.float32)
    b = jax.random.uniform(k_b, (2,), minval=-bound, maxval=bound,
                           dtype=jnp.float32)

    out = moe_soft_routing_mixer(h_A, h_B, W, b)
    out = jax.block_until_ready(out)

    ref = _reference(h_A, h_B, W, b)
    assert out.shape == (batch, d_model)
    assert jnp.allclose(out, ref, atol=1e-5, rtol=1e-5), "mismatch vs reference"

    print("KERNEL_OK")
</pallas_src>

<mosaic_0001>
module attributes {stable_mosaic.version = 11 : i64} {
  func.func @_moe_mixer_kernel(%arg0: i32, %arg1: memref<1xf32, #tpu.memory_space<smem>>, %arg2: memref<8x32xf32, #tpu.memory_space<vmem>>, %arg3: memref<8x32xf32, #tpu.memory_space<vmem>>, %arg4: memref<1x32xf32, #tpu.memory_space<vmem>>, %arg5: memref<1x32xf32, #tpu.memory_space<vmem>>, %arg6: memref<8x32xf32, #tpu.memory_space<vmem>>) attributes {dimension_semantics = [#tpu.dimension_semantics<parallel>], iteration_bounds = array<i64: 2>, scalar_prefetch = 0 : i64, scratch_operands = 0 : i64, tpu.core_type = #tpu.core_type<tc>, window_params = [{transform_indices = @transform_0, window_bounds = array<i64: 1>}, {transform_indices = @transform_1, window_bounds = array<i64: 8, 32>}, {transform_indices = @transform_2, window_bounds = array<i64: 8, 32>}, {pipeline_mode = #tpu.pipeline_mode<synchronous>, transform_indices = @transform_3, window_bounds = array<i64: 1, 32>}, {pipeline_mode = #tpu.pipeline_mode<synchronous>, transform_indices = @transform_4, window_bounds = array<i64: 1, 32>}, {transform_indices = @transform_5, window_bounds = array<i64: 8, 32>}]} {
    %c0 = arith.constant 0 : index
    %c0_0 = arith.constant 0 : index
    %0 = vector.load %arg2[%c0, %c0_0] : memref<8x32xf32, #tpu.memory_space<vmem>>, vector<8x32xf32>
    %c0_1 = arith.constant 0 : index
    %c0_2 = arith.constant 0 : index
    %1 = vector.load %arg3[%c0_1, %c0_2] : memref<8x32xf32, #tpu.memory_space<vmem>>, vector<8x32xf32>
    %c0_3 = arith.constant 0 : index
    %c0_4 = arith.constant 0 : index
    %2 = vector.load %arg4[%c0_3, %c0_4] : memref<1x32xf32, #tpu.memory_space<vmem>>, vector<1x32xf32>
    %3 = vector.broadcast %2 : vector<1x32xf32> to vector<8x32xf32>
    %4 = arith.mulf %0, %3 : vector<8x32xf32>
    %c0_5 = arith.constant 0 : index
    %c0_6 = arith.constant 0 : index
    %5 = vector.load %arg5[%c0_5, %c0_6] : memref<1x32xf32, #tpu.memory_space<vmem>>, vector<1x32xf32>
    %6 = vector.broadcast %5 : vector<1x32xf32> to vector<8x32xf32>
    %7 = arith.mulf %1, %6 : vector<8x32xf32>
    %8 = arith.addf %4, %7 : vector<8x32xf32>
    %cst = arith.constant dense<0.000000e+00> : vector<8xf32>
    %9 = vector.multi_reduction <add>, %8, %cst [1] : vector<8x32xf32> to vector<8xf32>
    %10 = vector.shape_cast %9 : vector<8xf32> to vector<8x1xf32>
    %c0_7 = arith.constant 0 : index
    %11 = memref.load %arg1[%c0_7] : memref<1xf32, #tpu.memory_space<smem>>
    %12 = vector.broadcast %11 : f32 to vector<8x1xf32>
    %13 = arith.addf %10, %12 : vector<8x1xf32>
    %cst_8 = arith.constant 0.000000e+00 : f32
    %14 = vector.broadcast %cst_8 : f32 to vector<8x1xf32>
    %15 = arith.subf %14, %13 : vector<8x1xf32>
    %16 = math.exp %15 : vector<8x1xf32>
    %cst_9 = arith.constant 1.000000e+00 : f32
    %17 = vector.broadcast %cst_9 : f32 to vector<8x1xf32>
    %18 = arith.addf %17, %16 : vector<8x1xf32>
    %cst_10 = arith.constant 1.000000e+00 : f32
    %19 = vector.broadcast %cst_10 : f32 to vector<8x1xf32>
    %20 = arith.divf %19, %18 : vector<8x1xf32>
    %21 = arith.subf %0, %1 : vector<8x32xf32>
    %22 = vector.broadcast %20 : vector<8x1xf32> to vector<8x32xf32>
    %23 = arith.mulf %22, %21 : vector<8x32xf32>
    %24 = arith.addf %1, %23 : vector<8x32xf32>
    %c0_11 = arith.constant 0 : index
    %c0_12 = arith.constant 0 : index
    %25 = vector.load %arg6[%c0_11, %c0_12] : memref<8x32xf32, #tpu.memory_space<vmem>>, vector<8x32xf32>
    tpu.vector_store %arg6[%c0_11, %c0_12], %24 {strides = array<i32>} : memref<8x32xf32, #tpu.memory_space<vmem>>, vector<8x32xf32>,
    return
  }
  func.func @transform_0(%arg0: i32) -> i32 {
    %c0_i32 = arith.constant 0 : i32
    %c0_i32_0 = arith.constant 0 : i32
    return %c0_i32 : i32
  }
  func.func @transform_1(%arg0: i32) -> (i32, i32) {
    %c0_i32 = arith.constant 0 : i32
    %c0_i32_0 = arith.constant 0 : i32
    return %arg0, %c0_i32 : i32, i32
  }
  func.func @transform_2(%arg0: i32) -> (i32, i32) {
    %c0_i32 = arith.constant 0 : i32
    %c0_i32_0 = arith.constant 0 : i32
    return %arg0, %c0_i32 : i32, i32
  }
  func.func @transform_3(%arg0: i32) -> (i32, i32) {
    %c0_i32 = arith.constant 0 : i32
    %c0_i32_0 = arith.constant 0 : i32
    %c0_i32_1 = arith.constant 0 : i32
    return %c0_i32, %c0_i32_0 : i32, i32
  }
  func.func @transform_4(%arg0: i32) -> (i32, i32) {
    %c0_i32 = arith.constant 0 : i32
    %c0_i32_0 = arith.constant 0 : i32
    %c0_i32_1 = arith.constant 0 : i32
    return %c0_i32, %c0_i32_0 : i32, i32
  }
  func.func @transform_5(%arg0: i32) -> (i32, i32) {
    %c0_i32 = arith.constant 0 : i32
    %c0_i32_0 = arith.constant 0 : i32
    return %arg0, %c0_i32 : i32, i32
  }
}

</mosaic_0001>

<bundles_post_ra>
// kernel: tpu_custom_call.1
= control target key start
LH: loop header
LB: loop body
LE: loop exit
PB: predicated region body
PF: predicated region fallthrough
CT: control target
= control target key end

     0   :  { %s844_s0 = inlined_call_operand.<no memory space> [shape: f32[1], index: 0, kind: input, shape index: {}]   ;;  %s845_s1 = inlined_call_operand.hbm [shape: f32[16,32], index: 1, kind: input, shape index: {}]   ;;  %s846_s2 = inlined_call_operand.hbm [shape: f32[16,32], index: 2, kind: input, shape index: {}]   ;;  %s847_s3 = inlined_call_operand.vmem [shape: f32[1,32], index: 3, kind: input, shape index: {}]   ;;  %s848_s4 = inlined_call_operand.vmem [shape: f32[1,32], index: 4, kind: input, shape index: {}]   ;;  %s849_s5 = inlined_call_operand.hbm [shape: f32[16,32], index: 5, kind: output, shape index: {}]  }
   0x1   :  { %850 = sst [smem:[#allocation12_spill]] %s845_s1 }
   0x2   :  { %10 = sst [smem:[#allocation2]] %s844_s0 }
   0x3   :  { %11 = vsyncpa [#allocation4], 0 }
   0x4   :  { %13 = vsyncpa [#allocation4 + $0x1], 0 }
   0x5   :  { %14 = vsyncpa [#allocation7], 0 }
   0x6   :  { %16 = vsyncpa [#allocation7 + $0x1], 0 }
   0x7   :  { %17 = vsyncpa [#allocation5], 0 }
   0x8   :  { %19 = vsyncpa [#allocation5 + $0x1], 0  ;;  %s671_s20 = smov 0   ;;  %s673_s21 = smov 0  }
   0x9   :  { %s675_s22 = smov 0   ;;  %s677_s23 = smov 0  }
   0xa LB: > { %s692_s0 = sadd.s32 4294967295, %s636_s23   ;;  %s434_s24 = sadd.s32 4294967294, %s636_s23   ;;  %s636_s23 = sphi %s677_s23, %s862_s23   ;;  %s632_s22 = sphi %s675_s22, %s861_s22   ;;  %s628_s21 = sphi %s673_s21, %s860_s21   ;;  %s624_s20 = sphi %s671_s20, %s859_s20  }
   0xb   : > { %s696_s25 = sadd.s32 1, %s636_s23   ;;  %s53_s26 = sadd.s32 1, %s632_s22 }
   0xc   : > { %s50_s27 = ssub.s32 %s636_s23, %s696_s25  ;;  %p60_p0 = scmp.ne.s32.totalorder %s632_s22, %s628_s21 }
   0xd   : > { %p51_p1 = scmp.eq.s32.totalorder %s50_s27, 0  ;;  %p61_p2 = scmp.eq.s32.totalorder %s636_s23, 0 }
   0xe   : > { %p66_p3 = scmp.ne.s32.totalorder %s628_s21, %s624_s20  ;;  %p67_p4 = scmp.eq.s32.totalorder %s692_s0, 0 }
   0xf   : > { %s708_s28 = scalar_select %p51_p1, %s632_s22, %s53_s26  }
  0x10   : > { %p710_p5 = por %p61_p2, %p60_p0  ;;  %p714_p6 = por %p67_p4, %p66_p3 }
  0x11   : > { %p158_p7 = scmp.eq.s32.totalorder %s692_s0, 1  ;;  %p164_p8 = scmp.eq.s32.totalorder %s434_s24, 1 }
  0x12   : > { %p466_p10 = scmp.lt.s32.totalorder %s636_s23, 2  ;;  %s730_s8 = sand.u32 1, %s632_s22  }
  0x13   : > { %p721_p11 = por %p158_p7, %p60_p0  ;;  %p725_p12 = por %p164_p8, %p66_p3 }
  0x14   : > { %s438_s9 = sshll.u32 %s636_s23, 3  ;;  %s437_s10 = sshll.u32 %s730_s8, 3 }
  0x15   : > { %s855_s1 = sld [smem:[#allocation12_spill]]  ;;  %s197_s15 = scalar_lea.vmem [#allocation3], %s437_s10 }
  0x16   : > { %s205_s16 = sshll.u32 %s197_s15, 4  ;;  %p739_p13 = pnand %p466_p10, %p710_p5  ;;  %s206_s16 = int_to_ptr.vmem [resolvable:$true] %s205_s16 }
  0x17   : > { %p441_p0 = scmp.ge.s32.totalorder %s636_s23, 1  ;;  %p229_p1 = scmp.lt.s32.totalorder %s636_s23, 3 }
  0x18   : > { %s194_s18 = scalar_lea.sflag [#allocation4], %s730_s8  ;;  %p510_p3 = pneg %p739_p13 }
  0x1b   : > { %s201_s13 = scalar_lea.hbm %s855_s1, %s438_s9  ;;  %s513_s29 = scalar_lea.hbm %s855_s1, 16 }
  0x1c   : > { %s203_s14 = sshll.u32 %s201_s13, 4  ;;  %s204_s14 = int_to_ptr.hbm [resolvable:$true] %s203_s14 }
  0x1d   : > { %s506_s19 = sshra.s32 %s204_s14, 4  ;;  %s507_s19 = int_to_ptr.hbm [resolvable:$true] %s506_s19 }
  0x1e   : > { %s508_s24 = scalar_lea.hbm %s507_s19, 8  ;;  %p514_p5 = scmp.lt.s32.totalorder %s507_s19, %s855_s1 }
  0x1f   : > { %p509_p2 = scmp.ne.s32.totalorder %s507_s19, %s508_s24  ;;  %p515_p8 = scmp.lt.s32.totalorder %s513_s29, %s508_s24 }
  0x21   : > { %p511_p4 = pnand %p510_p3, %p509_p2  ;;  %p516_p10 = por %p515_p8, %p514_p5 }
  0x23   : > { %p512_p7 = pneg %p511_p4 }
  0x25   : > { %p517_p9 = pnand %p516_p10, %p512_p7 }
  0x27   : > { %520 = shalt.err (!%p517_p9)
}
  0x28   : > { %458 = dma.hbm_to_vmem [thread:$0]  (!%p739_p13), %s204_s14, 128, %s206_s16, %s194_s18  }
  0x29   : > { %p763_p2 = pnand %p441_p0, %p229_p1  ;;  %s220_s19 = scalar_lea.hbm %s846_s2, %s438_s9 }
  0x2a   : > { %s222_s24 = sshll.u32 %s220_s19, 4  ;;  %s216_s27 = scalar_lea.vmem [#allocation6], %s437_s10  ;;  %s223_s24 = int_to_ptr.hbm [resolvable:$true] %s222_s24 }
  0x2b   : > { %s224_s29 = sshll.u32 %s216_s27, 4  ;;  %s213_s11 = scalar_lea.sflag [#allocation7], %s730_s8  ;;  %s225_s29 = int_to_ptr.vmem [resolvable:$true] %s224_s29 }
  0x2c   : > { %s536_s12 = sshra.s32 %s223_s24, 4  ;;  %s543_s18 = scalar_lea.hbm %s846_s2, 16  ;;  %s537_s12 = int_to_ptr.hbm [resolvable:$true] %s536_s12 }
  0x2d   : > { %s538_s1 = scalar_lea.hbm %s537_s12, 8  ;;  %p544_p4 = scmp.lt.s32.totalorder %s537_s12, %s846_s2 }
  0x2e   : > { %p539_p9 = scmp.ne.s32.totalorder %s537_s12, %s538_s1  ;;  %p545_p7 = scmp.lt.s32.totalorder %s543_s18, %s538_s1 }
  0x30   : > { %p541_p0 = pnand %p539_p9, %p510_p3  ;;  %p546_p5 = por %p545_p7, %p544_p4 }
  0x32   : > { %p542_p1 = pneg %p541_p0 }
  0x34   : > { %p547_p8 = pnand %p546_p5, %p542_p1 }
  0x36   : > { %550 = shalt.err (!%p547_p8)
}
  0x37   : > { %461 = dma.hbm_to_vmem [thread:$0]  (!%p739_p13), %s223_s24, 128, %s225_s29, %s213_s11  }
  0x38   : > { %233 = sbr.rel (%p763_p2) target bundleno = 227 (0xe3), region = 40  ;;  %s785_s8 = sand.u32 (!%p763_p2), 1, %s628_s21  }
  0x39   : > { %s788_s10 = sshll.u32 (!%p763_p2), %s785_s8, 3  ;;  %s236_s26 = scalar_lea.sflag (!%p763_p2), [#allocation4], %s785_s8 }
  0x3a   : > { %s239_s1 = scalar_lea.vmem (!%p763_p2), [#allocation3], %s788_s10 }
  0x3d   : > { %611 = dma.done.wait (%p714_p6), %s236_s26, 128  }
  0x3e   : > { %613 = vsyncadd (%p714_p6), %s236_s26, 4294967168  ;;  %s246_s17 = scalar_lea.sflag [#allocation7], %s785_s8  ;;  %s249_s13 = scalar_lea.vmem [#allocation6], %s788_s10 }
  0x3f   : > { %615 = dma.done.wait (%p714_p6), %s246_s17, 128  }
  0x40   : > { %617 = vsyncadd (%p714_p6), %s246_s17, 4294967168  ;;  %v282_v0 = vld [vmem:[%s239_s1] sm:$0xff]  ;;  %v283_v1 = vld [vmem:[%s249_s13] sm:$0xff]  ;;  %vm295_vm0 = vcmask 261120   ;;  %s299_s30 = sld [smem:[#allocation2]]  ;;  %s446_s11 = sshll.u32 %s692_s0, 3 }
  0x41   : > { %v500_v2 = vld [vmem:[%s847_s3] ss:$0 sm:$0xff]  ;;  %v321_v21 = vsub.f32 %v282_v0, %v283_v1  ;;  %s336_s16 = scalar_lea.hbm %s849_s5, %s446_s11  ;;  %s281_s18 = scalar_lea.vmem [#allocation8], %s788_s10 }
  0x42   : > { %v501_v3 = vld [vmem:[%s848_s4] ss:$0 sm:$0xff]  ;;  %v288_v4 = vmul.f32 %v500_v2, %v282_v0  ;;  %s338_s15 = sshll.u32 %s281_s18, 4  ;;  %s340_s0 = sshll.u32 %s336_s16, 4  ;;  %s339_s15 = int_to_ptr.vmem [resolvable:$true] %s338_s15  ;;  %s341_s0 = int_to_ptr.hbm [resolvable:$true] %s340_s0 }
  0x43   : > { %v293_v5 = vmul.f32 %v501_v3, %v283_v1  ;;  %s326_s9 = scalar_lea.sflag [#allocation5], %s785_s8  ;;  %s580_s26 = sshra.s32 %s341_s0, 4  ;;  %s581_s26 = int_to_ptr.hbm [resolvable:$true] %s580_s26 }
  0x44   : > { %s582_s1 = scalar_lea.hbm %s581_s26, 8  ;;  %s586_s10 = scalar_lea.hbm %s849_s5, 16 }
  0x45   : > { %v294_v6 = vadd.f32 %v293_v5, %v288_v4  ;;  %p583_p6 = scmp.ne.s32.totalorder %s581_s26, %s582_s1  ;;  %p587_p10 = scmp.lt.s32.totalorder %s581_s26, %s849_s5 }
  0x46   : > { %v300_v8 = vstv %s299_s30  ;;  %p588_p2 = scmp.lt.s32.totalorder %s586_s10, %s582_s1 }
  0x47   : > { %v296_v7 = vsel %vm295_vm0, %v294_v6, 0.0  ;;  %p584_p13 = pnand %p583_p6, %p721_p11 }
  0x48   : > { %297 = vadd.xlane.f32.xlu0 %v296_v7  ;;  %p589_p9 = por %p588_p2, %p587_p10 }
  0x49   : > { %p585_p3 = pneg %p584_p13 }
  0x4b   : > { %p590_p0 = pnand %p589_p9, %p585_p3 }
  0xbb   : > { %v298_v9 = vpop.xlane.xlu0 %297 }
  0xbc   : > { %v301_v10 = vadd.f32 %v300_v8, %v298_v9 }
  0xbe   : > { %v302_v11 = vsub.f32 0.0, %v301_v10 }
  0xc0   : > { %v303_v12 = vmul.f32 1.442695, %v302_v11 }
  0xc2   : > { %502 = vpow2.f32 %v303_v12 }
  0xc8   : > { %v503_v13 = vpop.eup %502 }
  0xc9   : > { %v305_v14 = vadd.f32 1.0, %v503_v13 }
  0xcb   : > { %504 = vrcp.f32 %v305_v14  ;;  %v317_v18 = vand.u32 2147483648, %v305_v14  ;;  %v315_v20 = vand.u32 2147483647, %v305_v14  ;;  %vm311_vm2 = vweird.f32 %v305_v14 }
  0xcd   : > { %v318_v23 = vor.u32 1.1754944e-38, %v317_v18  ;;  %vm316_vm4 = vcmp.eq.f32.partialorder %v315_v20, 8.507059e+37 }
  0xd1   : > { %v505_v15 = vpop.eup %504 }
  0xd2   : > { %v307_v16 = vmul.f32 %v505_v15, %v305_v14  ;;  %vm312_vm1 = vweird.f32 %v505_v15 }
  0xd3   : > { %vm313_vm3 = vmor %vm311_vm2, %vm312_vm1 }
  0xd4   : > { %v308_v17 = vsub.f32 1.0, %v307_v16 }
  0xd6   : > { %v309_v19 = vmul.f32 %v505_v15, %v308_v17 }
  0xd8   : > { %v310_v22 = vadd.f32 %v505_v15, %v309_v19 }
  0xda   : > { %v314_v24 = vsel %vm313_vm3, %v505_v15, %v310_v22 }
  0xdb   : > { %v319_v25 = vsel %vm316_vm4, %v318_v23, %v314_v24 }
  0xdc   : > { %v322_v26 = vmul.f32 %v321_v21, %v319_v25 }
  0xde   : > { %v323_v27 = vadd.f32 %v322_v26, %v283_v1 }
  0xe0   : > { %324 = vst.msk [vmem:[%s281_s18] sm:$0xff] %vm295_vm0, %v323_v27 }
  0xe1   : > { %593 = shalt.err (!%p590_p0)
}
  0xe2   : > { %453 = dma.vmem_to_hbm [thread:$0]  (%p721_p11), %s339_s15, 128, %s341_s0, %s326_s9  }
  0xe3 PF: > { %s352_s8 = sand.u32 1, %s624_s20   ;;  %p858_p1 = scmp.ge.s32.totalorder %s636_s23, 2 }
  0xe4   : > { %s353_s27 = scalar_lea.sflag [#allocation5], %s352_s8 }
  0xe5   : > { %p463_p4 = pnand %p858_p1, %p725_p12 }
  0xe7   : > { %p464_p7 = pneg %p463_p4 }
  0xe9   : > { %619 = dma.done.wait (%p464_p7), %s353_s27, 128  }
  0xea   : > { %621 = vsyncadd (%p464_p7), %s353_s27, 4294967168  ;;  %p22_p5 = scmp.ge.s32.totalorder %s696_s25, 4   ;;  %s859_s20 = smov %s628_s21 }
  0xeb   : > { %s860_s21 = smov %s632_s22  ;;  %s861_s22 = smov %s708_s28 }
  0xec   : > { %s862_s23 = smov %s696_s25  ;;  %24 = sbr.rel (!%p22_p5) target bundleno = 10 (0xa), region = 98 }
  0xf1   :  { %359 = vsyncpa [#allocation4], 1 }
  0xf2   :  { %361 = vsyncpa [#allocation4 + $0x1], 1 }
  0xf3   :  { %362 = vsyncpa [#allocation7], 1 }
  0xf4   :  { %364 = vsyncpa [#allocation7 + $0x1], 1 }
  0xf5   :  { %365 = vsyncpa [#allocation5], 1 }
  0xf6   :  { %367 = vsyncpa [#allocation5 + $0x1], 1 }

</bundles_post_ra>
